<compile_context>
chip_gen: v5e
topology: v5e:2x2
jax: 0.10.0
libtpu: 0.0.40
codegen_flags: <defaults>
</compile_context>

<pallas_src>
import functools

import jax
import jax.numpy as jnp
from jax.experimental import pallas as pl
from jax.experimental.pallas import tpu as pltpu


def _round_up(a: int, b: int) -> int:
    return (a + b - 1) // b * b


def _linear_embedding_kernel(x_ref, o_ref, *, mult):
    # Pure VPU elementwise hot path: y = x * (scale / size).
    # `mult` is a weakly-typed Python float so bf16/f16 inputs stay in their
    # native dtype (no accidental upcast to f32 inside the kernel).
    o_ref[...] = x_ref[...] * mult


def linear_embedding(
    x: jax.Array,
    size: int,
    scale: float = 1.0,
    *,
    block_rows: int = 1024,          # rows per tile for f32 (~4 MiB tiles)
    max_lane_width: int = 1024,
    min_pallas_elements: int = 1 << 20,  # below ~4 MiB of data, let XLA fuse
) -> jax.Array:
    """Pallas equivalent of LinearEmbedding.forward: (x / size * scale)[..., None].

    Accepts an array of any rank; returns the scaled array with a trailing
    singleton dimension appended (matching torch's `unsqueeze(-1)`).
    """
    orig_shape = x.shape
    n = x.size
    mult = float(scale) / float(size)

    # Fallback paths (all avoid pad / tail-slice / launch overhead entirely):
    #   * non-float dtypes: keep torch's int->float promotion via true division
    #   * empty or small inputs: a standalone memory-bound kernel can at best
    #     tie XLA's fused elementwise op, so fusing is strictly better
    #   * n not a multiple of 128: would require a padded copy + tail slice,
    #     each a full extra HBM pass (~3x traffic) — not worth it.
    if (
        not jnp.issubdtype(x.dtype, jnp.floating)
        or n == 0
        or n < min_pallas_elements
        or n % 128 != 0
    ):
        return (x / size * scale)[..., None]

    # Lane-dense layout: largest multiple-of-128 width (<= max_lane_width) that
    # divides n exactly -> zero-copy reshape, unmasked lane-wide stores.
    cols = 128
    while cols * 2 <= max_lane_width and n % (cols * 2) == 0:
        cols *= 2
    rows = n // cols

    # Scale the row tile inversely with itemsize so bf16/fp8 keep ~4 MiB tiles;
    # keep it a multiple of 32 (covers 8/16/32-row sublane packing).
    itemsize = jnp.dtype(x.dtype).itemsize
    tm_rows = _round_up(max(block_rows * 4 // max(itemsize, 1), 32), 32)

    if rows <= tm_rows:
        tm, grid = rows, 1          # single block == full array: always legal
    else:
        tm, grid = tm_rows, pl.cdiv(rows, tm_rows)  # last block may be partial

    x2d = x.reshape(rows, cols)     # pure metadata reshape, no copy
    kernel = functools.partial(_linear_embedding_kernel, mult=mult)

    out2d = pl.pallas_call(
        kernel,
        out_shape=jax.ShapeDtypeStruct((rows, cols), x2d.dtype),
        grid=(grid,),
        in_specs=[pl.BlockSpec((tm, cols), lambda i: (i, 0))],
        out_specs=pl.BlockSpec((tm, cols), lambda i: (i, 0)),
        compiler_params=pltpu.CompilerParams(
            # No reduction axis -> "parallel": lets v7x shard row tiles across
            # both TensorCores; no-op on single-TC v5e/v6e.
            dimension_semantics=("parallel",),
            # ~16 MiB resident (double-buffered in+out @ ~4 MiB tiles); 48 MiB
            # limit is safe on v5e/v6e (128 MiB VMEM) and v7x (64 MiB VMEM).
            vmem_limit_bytes=48 * 1024 * 1024,
        ),
        cost_estimate=pl.CostEstimate(
            flops=n,
            transcendentals=0,
            bytes_accessed=2 * n * itemsize,
        ),
    )(x2d)

    # Append trailing singleton dim (torch unsqueeze(-1)): metadata only.
    return out2d.reshape(*orig_shape, 1)


if __name__ == "__main__":
    # LinearEmbedding has no learned parameters (size / scale are constants).
    size = 16
    scale = 2.0

    key = jax.random.PRNGKey(0)
    k1, k2 = jax.random.split(key)

    # Small example input: (batch=2, channels=4, seq=16, hidden=16) in float32.
    # min_pallas_elements=0 forces the Pallas path for this tiny demo; the real
    # default (1M elements) would route it to fused JAX instead.
    x = jax.random.normal(k1, (2, 4, 16, 16), dtype=jnp.float32)
    out = jax.block_until_ready(
        linear_embedding(x, size=size, scale=scale, min_pallas_elements=0)
    )
    ref = (x / size * scale)[..., None]
    assert out.shape == (2, 4, 16, 16, 1), out.shape
    assert out.dtype == x.dtype
    assert jnp.allclose(out, ref, atol=1e-6, rtol=1e-6)

    # Exercise the multi-block (grid > 1) path with a small row tile, bf16.
    x2 = jax.random.normal(k2, (1, 512, 1024), dtype=jnp.bfloat16)
    out2 = jax.block_until_ready(
        linear_embedding(x2, size=size, scale=scale,
                         block_rows=64, min_pallas_elements=0)
    )
    ref2 = (x2 / size * scale)[..., None]
    assert out2.shape == (1, 512, 1024, 1), out2.shape
    assert out2.dtype == x2.dtype
    assert jnp.allclose(out2.astype(jnp.float32), ref2.astype(jnp.float32),
                        atol=1e-2, rtol=1e-2)

    # Fallback path (size not a multiple of 128): plain fused JAX, no pad/slice.
    x3 = jax.random.normal(k1, (3, 5, 7), dtype=jnp.float32)
    out3 = jax.block_until_ready(linear_embedding(x3, size=size, scale=scale))
    assert out3.shape == (3, 5, 7, 1), out3.shape
    assert jnp.allclose(out3, (x3 / size * scale)[..., None], atol=1e-6, rtol=1e-6)

    print("KERNEL_OK")
</pallas_src>

<mosaic_0001>
module attributes {stable_mosaic.version = 11 : i64} {
  func.func @_linear_embedding_kernel(%arg0: i32, %arg1: memref<2x1024xf32, #tpu.memory_space<vmem>>, %arg2: memref<2x1024xf32, #tpu.memory_space<vmem>>) attributes {dimension_semantics = [#tpu.dimension_semantics<parallel>], iteration_bounds = array<i64: 1>, scalar_prefetch = 0 : i64, scratch_operands = 0 : i64, tpu.core_type = #tpu.core_type<tc>, window_params = [{transform_indices = @transform_0, window_bounds = array<i64: 2, 1024>}, {transform_indices = @transform_1, window_bounds = array<i64: 2, 1024>}]} {
    %c0 = arith.constant 0 : index
    %c0_0 = arith.constant 0 : index
    %0 = vector.load %arg1[%c0, %c0_0] : memref<2x1024xf32, #tpu.memory_space<vmem>>, vector<2x1024xf32>
    %cst = arith.constant 1.250000e-01 : f32
    %1 = vector.broadcast %cst : f32 to vector<2x1024xf32>
    %2 = arith.mulf %0, %1 : vector<2x1024xf32>
    %c0_1 = arith.constant 0 : index
    %c0_2 = arith.constant 0 : index
    %3 = vector.load %arg2[%c0_1, %c0_2] : memref<2x1024xf32, #tpu.memory_space<vmem>>, vector<2x1024xf32>
    tpu.vector_store %arg2[%c0_1, %c0_2], %2 {strides = array<i32>} : memref<2x1024xf32, #tpu.memory_space<vmem>>, vector<2x1024xf32>,
    return
  }
  func.func @transform_0(%arg0: i32) -> (i32, i32) {
    %c0_i32 = arith.constant 0 : i32
    %c0_i32_0 = arith.constant 0 : i32
    return %arg0, %c0_i32 : i32, i32
  }
  func.func @transform_1(%arg0: i32) -> (i32, i32) {
    %c0_i32 = arith.constant 0 : i32
    %c0_i32_0 = arith.constant 0 : i32
    return %arg0, %c0_i32 : i32, i32
  }
}

</mosaic_0001>

<bundles_post_ra>
// kernel: tpu_custom_call.1
= control target key start
LH: loop header
LB: loop body
LE: loop exit
PB: predicated region body
PF: predicated region fallthrough
CT: control target
= control target key end

     0   :  { %6 = vsyncpa [#allocation3], 0  ;;  %s118_s0 = inlined_call_operand.hbm [shape: f32[2,1024], index: 0, kind: input, shape index: {}]   ;;  %s119_s1 = inlined_call_operand.hbm [shape: f32[2,1024], index: 1, kind: output, shape index: {}]  }
   0x1   :  { %7 = vsyncpa [#allocation4], 0  ;;  %s13_s8 = sshll.u32 %s118_s0, 4  ;;  %s100_s9 = smov [#allocation2]   ;;  %s14_s8 = int_to_ptr.hbm [resolvable:$true] %s13_s8 }
   0x2   :  { %s15_s10 = sshll.u32 %s100_s9, 4  ;;  %s16_s10 = int_to_ptr.vmem [resolvable:$true] %s15_s10 }
   0x3   :  { %18 = dma.hbm_to_vmem [thread:$0]  %s14_s8, 256, %s16_s10, [#allocation3]  }
   0x4   :  { %96 = dma.done.wait [#allocation3], 256  }
   0x5   :  { %97 = vsyncadd [#allocation3], 4294967040  ;;  %s101_s11 = smov [#allocation5]   ;;  %s36_s15 = sshll.u32 %s119_s1, 4  ;;  %v23_v0 = vld [vmem:[#allocation2] sm:$0xff]  ;;  %v24_v1 = vld [vmem:[#allocation2 + $0x8] sm:$0xff]  ;;  %s37_s15 = int_to_ptr.hbm [resolvable:$true] %s36_s15 }
   0x6   :  { %s34_s12 = sshll.u32 %s101_s11, 4  ;;  %v25_v2 = vmul.f32 0.125, %v23_v0  ;;  %v26_v3 = vmul.f32 0.125, %v24_v1  ;;  %s35_s12 = int_to_ptr.vmem [resolvable:$true] %s34_s12 }
   0x8   :  { %27 = vst [vmem:[#allocation5] sm:$0xff] %v25_v2 }
   0x9   :  { %28 = vst [vmem:[#allocation5 + $0x8] sm:$0xff] %v26_v3 }
   0xa   :  { %39 = dma.vmem_to_hbm [thread:$0]  %s35_s12, 256, %s37_s15, [#allocation4]  }
   0xb   :  { %98 = dma.done.wait [#allocation4], 256  }
   0xc   :  { %99 = vsyncadd [#allocation4], 4294967040 }
   0xd   :  { %44 = vsyncpa [#allocation3], 1 }
   0xe   :  { %45 = vsyncpa [#allocation4], 1 }

</bundles_post_ra>
